<compile_context>
chip_gen: v6e
topology: v6e:2x2x1
jax: 0.10.0
libtpu: 0.0.40
codegen_flags: <defaults>
</compile_context>

<pallas_src>
import jax
import jax.numpy as jnp
from jax import lax
from jax.experimental import pallas as pl
from jax.experimental.pallas import tpu as pltpu


def _downsample_kernel(x_ref, w_ref, b_ref, o_ref, xt_ref, carry_ref):
    """One (batch, L_out-tile) grid step.

    x_ref:     (C, 2*TL)  NCL input block (C on sublanes, L window on lanes)
    w_ref:     (3, C, C)  per-tap weights, w_ref[k][ci, co]
    b_ref:     (1, C)     bias row
    o_ref:     (C, TL)    output tile, written directly in NCL layout
    xt_ref:    (2*TL, C)  VMEM scratch: transposed input block
    carry_ref: (1, C)     last input column of the previous tile (left-tap halo)

    NOTE: the halo carry requires grid axis 1 (the L_out-tile axis) to stay the
    innermost, sequentially executed ("arbitrary") axis; only the batch axis
    may be "parallel".
    """
    TL = o_ref.shape[1]
    two_tl = xt_ref.shape[0]
    t = pl.program_id(1)

    # Conv's left zero padding: reset the halo at the start of each batch's
    # tile sequence (also avoids reading uninitialized scratch).
    @pl.when(t == 0)
    def _():
        carry_ref[...] = jnp.zeros_like(carry_ref)

    # Single in-VMEM relayout (C, 2*TL) -> (2*TL, C).  Replaces the former
    # wrapper-side HBM transpose pass on the whole input.
    xt_ref[...] = x_ref[...].T

    # Stride-2 sublane taps: tap1[j] = x[2*lo], tap2[j] = x[2*lo + 1].
    tap1 = xt_ref[pl.ds(0, TL, stride=2), :]
    tap2 = xt_ref[pl.ds(1, TL, stride=2), :]

    # Left tap: tap0[j] = x[2*lo - 1].  Row 0 comes from the previous tile's
    # last input column (zero at t == 0 == the conv's left padding).
    prev = carry_ref[...]
    tap0 = jnp.concatenate([prev, tap2[:TL - 1]], axis=0)

    y = jnp.dot(tap0, w_ref[0], preferred_element_type=jnp.float32)
    y = y + jnp.dot(tap1, w_ref[1], preferred_element_type=jnp.float32)
    y = y + jnp.dot(tap2, w_ref[2], preferred_element_type=jnp.float32)
    y = y + b_ref[...]

    # Direct NCL store (lane dim = TL, a multiple of 128 whenever tiled).
    o_ref[...] = y.T.astype(o_ref.dtype)

    # Halo for the next tile = last input column of this block.
    carry_ref[...] = xt_ref[two_tl - 1:two_tl, :]


def _pick_vmem_limit():
    # ~3/4 of device VMEM, capped at 96 MiB: big tiles approach the HBM
    # roofline on v5e/v6e (128 MiB) while staying inside v7x's 64 MiB.
    try:
        cap = pltpu.get_tpu_info().vmem_capacity_bytes
        return int(min(96 * 1024 * 1024, (cap * 3) // 4))
    except Exception:
        return None


def downsample(x_ncl, weight, bias, *, tile_rows=512):
    """Pallas equivalent of Downsample.forward (Conv1d k=3, s=2, p=1).

    x_ncl:  (B, C, L)   float32, PyTorch NCL layout
    weight: (C, C, 3)   PyTorch Conv1d weight layout (out, in, k)
    bias:   (C,)
    returns (B, C, L_out) with L_out = (L + 2*1 - 3)//2 + 1
    """
    B, C, L = x_ncl.shape
    assert weight.shape == (C, C, 3) and bias.shape == (C,)
    L_out = (L + 1) // 2                     # == (L + 2 - 3)//2 + 1
    L_eff = 2 * L_out                        # even; == L or L + 1

    x = x_ncl
    if L_eff != L:
        # Odd L: the last output's right tap reads index L, which must be the
        # conv's zero padding (see TODO above for the mask-based alternative).
        x = jnp.pad(x_ncl, ((0, 0), (0, 0), (0, L_eff - L)))

    # Tile L_out.  When tiled, TL is a multiple of 128 so both the (C, 2*TL)
    # input window and the (C, TL) output tile stay lane-dense; ragged edges
    # are handled by Pallas' clipped partial blocks (no padded output).
    if L_out <= tile_rows:
        TL, n_t = L_out, 1
    else:
        assert tile_rows % 128 == 0, "tile_rows must be a multiple of 128"
        TL = tile_rows
        n_t = pl.cdiv(L_out, TL)

    w_taps = jnp.transpose(weight, (2, 1, 0))   # (3, C_in, C_out): [k, ci, co]
    b_row = bias.reshape(1, C)

    out = pl.pallas_call(
        _downsample_kernel,
        out_shape=jax.ShapeDtypeStruct((B, C, L_out), x_ncl.dtype),
        grid=(B, n_t),
        in_specs=[
            pl.BlockSpec((None, C, 2 * TL), lambda b, t: (b, 0, t)),
            pl.BlockSpec((3, C, C), lambda b, t: (0, 0, 0)),
            pl.BlockSpec((1, C), lambda b, t: (0, 0)),
        ],
        out_specs=pl.BlockSpec((None, C, TL), lambda b, t: (b, 0, t)),
        scratch_shapes=[
            pltpu.VMEM((2 * TL, C), x_ncl.dtype),   # transposed input block
            pltpu.VMEM((1, C), x_ncl.dtype),        # left-tap halo carry
        ],
        compiler_params=pltpu.CompilerParams(
            # Batch axis may shard across TensorCores; the tile axis carries
            # the halo and must stay sequential ("arbitrary", innermost).
            dimension_semantics=("parallel", "arbitrary"),
            vmem_limit_bytes=_pick_vmem_limit(),
        ),
        cost_estimate=pl.CostEstimate(
            flops=2 * B * L_out * (3 * C) * C,
            transcendentals=0,
            bytes_accessed=(B * C * L_eff + B * C * L_out
                           + w_taps.size + b_row.size) * 4,
        ),
    )(x, w_taps, b_row)

    return out


if __name__ == "__main__":
    key = jax.random.PRNGKey(0)
    kx, kw, kb, kx2, kx3 = jax.random.split(key, 5)

    B, DIM = 2, 8
    fan_in = DIM * 3
    bound = 1.0 / (fan_in ** 0.5)
    weight = jax.random.uniform(kw, (DIM, DIM, 3), jnp.float32, -bound, bound)
    bias = jax.random.uniform(kb, (DIM,), jnp.float32, -bound, bound)

    def ref_conv(x):
        return lax.conv_general_dilated(
            x, weight, window_strides=(2,), padding=((1, 1),),
            dimension_numbers=("NCH", "OIH", "NCH")) + bias[None, :, None]

    # ---- 1) small, even L, single tile (typical toy shape for the module)
    L1 = 16
    x1 = jax.random.normal(kx, (B, DIM, L1), dtype=jnp.float32)
    out1 = downsample(x1, weight, bias)
    jax.block_until_ready(out1)
    ref1 = ref_conv(x1)
    assert out1.shape == (B, DIM, (L1 + 2 - 3) // 2 + 1)
    assert jnp.allclose(out1, ref1, atol=1e-5, rtol=1e-5)

    # ---- 2) odd L, multi-tile: exercises the halo carry across L_out tiles,
    #         clipped (ragged) input/output blocks, and odd-L right edge.
    L2 = 301
    x2 = jax.random.normal(kx2, (B, DIM, L2), dtype=jnp.float32)
    out2 = downsample(x2, weight, bias, tile_rows=128)
    jax.block_until_ready(out2)
    ref2 = ref_conv(x2)
    assert out2.shape == ref2.shape
    assert jnp.allclose(out2, ref2, atol=1e-5, rtol=1e-5)

    # ---- 3) even L, multi-tile, ragged edge: input read exactly once (no pad).
    L3 = 260
    x3 = jax.random.normal(kx3, (B, DIM, L3), dtype=jnp.float32)
    out3 = downsample(x3, weight, bias, tile_rows=128)
    jax.block_until_ready(out3)
    ref3 = ref_conv(x3)
    assert out3.shape == ref3.shape
    assert jnp.allclose(out3, ref3, atol=1e-5, rtol=1e-5)

    print("KERNEL_OK")
</pallas_src>

<mosaic_0001>
module attributes {stable_mosaic.version = 11 : i64} {
  func.func @_downsample_kernel(%arg0: i32, %arg1: i32, %arg2: memref<1x8x16xf32, #tpu.memory_space<vmem>>, %arg3: memref<3x8x8xf32, #tpu.memory_space<vmem>>, %arg4: memref<1x8xf32, #tpu.memory_space<vmem>>, %arg5: memref<1x8x8xf32, #tpu.memory_space<vmem>>, %arg6: memref<16x8xf32, #tpu.memory_space<vmem>>, %arg7: memref<1x8xf32, #tpu.memory_space<vmem>>) attributes {dimension_semantics = [#tpu.dimension_semantics<parallel>, #tpu.dimension_semantics<arbitrary>], iteration_bounds = array<i64: 2, 1>, scalar_prefetch = 0 : i64, scratch_operands = 2 : i64, tpu.core_type = #tpu.core_type<tc>, window_params = [{transform_indices = @transform_0, window_bounds = array<i64: 1, 8, 16>}, {pipeline_mode = #tpu.pipeline_mode<synchronous>, transform_indices = @transform_1, window_bounds = array<i64: 3, 8, 8>}, {pipeline_mode = #tpu.pipeline_mode<synchronous>, transform_indices = @transform_2, window_bounds = array<i64: 1, 8>}, {transform_indices = @transform_3, window_bounds = array<i64: 1, 8, 8>}]} {
    %c0_i32 = arith.constant 0 : i32
    %0 = arith.cmpi eq, %arg1, %c0_i32 : i32
    %1 = arith.extui %0 : i1 to i32
    %c0_i32_0 = arith.constant 0 : i32
    %2 = arith.cmpi ne, %1, %c0_i32_0 : i32
    scf.if %2 {
      %cst_28 = arith.constant 0.000000e+00 : f32
      %32 = vector.broadcast %cst_28 : f32 to vector<1x8xf32>
      %c0_29 = arith.constant 0 : index
      %c0_30 = arith.constant 0 : index
      %33 = vector.load %arg7[%c0_29, %c0_30] : memref<1x8xf32, #tpu.memory_space<vmem>>, vector<1x8xf32>
      tpu.vector_store %arg7[%c0_29, %c0_30], %32 {strides = array<i32>} : memref<1x8xf32, #tpu.memory_space<vmem>>, vector<1x8xf32>,
    } else {
    }
    %c0 = arith.constant 0 : index
    %c0_1 = arith.constant 0 : index
    %c0_2 = arith.constant 0 : index
    %3 = vector.load %arg2[%c0, %c0_1, %c0_2] : memref<1x8x16xf32, #tpu.memory_space<vmem>>, vector<1x8x16xf32>
    %4 = vector.shape_cast %3 : vector<1x8x16xf32> to vector<8x16xf32>
    %5 = tpu.transpose %4, [1, 0] : vector<8x16xf32> -> vector<16x8xf32>
    %c0_3 = arith.constant 0 : index
    %c0_4 = arith.constant 0 : index
    %6 = vector.load %arg6[%c0_3, %c0_4] : memref<16x8xf32, #tpu.memory_space<vmem>>, vector<16x8xf32>
    tpu.vector_store %arg6[%c0_3, %c0_4], %5 {strides = array<i32>} : memref<16x8xf32, #tpu.memory_space<vmem>>, vector<16x8xf32>,
    %c0_5 = arith.constant 0 : index
    %c0_6 = arith.constant 0 : index
    %7 = tpu.strided_load %arg6[%c0_5, %c0_6] {strides = array<i32: 2, 1>} : memref<16x8xf32, #tpu.memory_space<vmem>>, vector<8x8xf32>
    %c1 = arith.constant 1 : index
    %c0_7 = arith.constant 0 : index
    %8 = tpu.strided_load %arg6[%c1, %c0_7] {strides = array<i32: 2, 1>} : memref<16x8xf32, #tpu.memory_space<vmem>>, vector<8x8xf32>
    %c0_8 = arith.constant 0 : index
    %c0_9 = arith.constant 0 : index
    %9 = vector.load %arg7[%c0_8, %c0_9] : memref<1x8xf32, #tpu.memory_space<vmem>>, vector<1x8xf32>
    %10 = vector.extract_strided_slice %8 {offsets = [0, 0], sizes = [7, 8], strides = [1, 1]} : vector<8x8xf32> to vector<7x8xf32>
    %11 = tpu.concatenate %9, %10 in 0 : vector<1x8xf32>, vector<7x8xf32> -> vector<8x8xf32>
    %c0_10 = arith.constant 0 : index
    %c0_11 = arith.constant 0 : index
    %c0_12 = arith.constant 0 : index
    %12 = vector.load %arg3[%c0_10, %c0_11, %c0_12] : memref<3x8x8xf32, #tpu.memory_space<vmem>>, vector<1x8x8xf32>
    %13 = vector.shape_cast %12 : vector<1x8x8xf32> to vector<8x8xf32>
    %cst = arith.constant dense<0.000000e+00> : vector<8x8xf32>
    %14 = tpu.matmul %11, %13, %cst {dimension_numbers = #tpu.dot_dimension_numbers<[1], [0], [0], [1], [0, 0, 1, 1], [], []>} : vector<8x8xf32>, vector<8x8xf32>, vector<8x8xf32> -> vector<8x8xf32>
    %c1_13 = arith.constant 1 : index
    %c0_14 = arith.constant 0 : index
    %c0_15 = arith.constant 0 : index
    %15 = vector.load %arg3[%c1_13, %c0_14, %c0_15] : memref<3x8x8xf32, #tpu.memory_space<vmem>>, vector<1x8x8xf32>
    %16 = vector.shape_cast %15 : vector<1x8x8xf32> to vector<8x8xf32>
    %cst_16 = arith.constant dense<0.000000e+00> : vector<8x8xf32>
    %17 = tpu.matmul %7, %16, %cst_16 {dimension_numbers = #tpu.dot_dimension_numbers<[1], [0], [0], [1], [0, 0, 1, 1], [], []>} : vector<8x8xf32>, vector<8x8xf32>, vector<8x8xf32> -> vector<8x8xf32>
    %18 = arith.addf %14, %17 : vector<8x8xf32>
    %c2 = arith.constant 2 : index
    %c0_17 = arith.constant 0 : index
    %c0_18 = arith.constant 0 : index
    %19 = vector.load %arg3[%c2, %c0_17, %c0_18] : memref<3x8x8xf32, #tpu.memory_space<vmem>>, vector<1x8x8xf32>
    %20 = vector.shape_cast %19 : vector<1x8x8xf32> to vector<8x8xf32>
    %cst_19 = arith.constant dense<0.000000e+00> : vector<8x8xf32>
    %21 = tpu.matmul %8, %20, %cst_19 {dimension_numbers = #tpu.dot_dimension_numbers<[1], [0], [0], [1], [0, 0, 1, 1], [], []>} : vector<8x8xf32>, vector<8x8xf32>, vector<8x8xf32> -> vector<8x8xf32>
    %22 = arith.addf %18, %21 : vector<8x8xf32>
    %c0_20 = arith.constant 0 : index
    %c0_21 = arith.constant 0 : index
    %23 = vector.load %arg4[%c0_20, %c0_21] : memref<1x8xf32, #tpu.memory_space<vmem>>, vector<1x8xf32>
    %24 = vector.broadcast %23 : vector<1x8xf32> to vector<8x8xf32>
    %25 = arith.addf %22, %24 : vector<8x8xf32>
    %26 = tpu.transpose %25, [1, 0] : vector<8x8xf32> -> vector<8x8xf32>
    %c0_22 = arith.constant 0 : index
    %c0_23 = arith.constant 0 : index
    %c0_24 = arith.constant 0 : index
    %27 = vector.load %arg5[%c0_22, %c0_23, %c0_24] : memref<1x8x8xf32, #tpu.memory_space<vmem>>, vector<1x8x8xf32>
    %28 = vector.shape_cast %27 : vector<1x8x8xf32> to vector<8x8xf32>
    %29 = vector.shape_cast %26 : vector<8x8xf32> to vector<1x8x8xf32>
    tpu.vector_store %arg5[%c0_22, %c0_23, %c0_24], %29 {strides = array<i32>} : memref<1x8x8xf32, #tpu.memory_space<vmem>>, vector<1x8x8xf32>,
    %c15 = arith.constant 15 : index
    %c0_25 = arith.constant 0 : index
    %30 = vector.load %arg6[%c15, %c0_25] : memref<16x8xf32, #tpu.memory_space<vmem>>, vector<1x8xf32>
    %c0_26 = arith.constant 0 : index
    %c0_27 = arith.constant 0 : index
    %31 = vector.load %arg7[%c0_26, %c0_27] : memref<1x8xf32, #tpu.memory_space<vmem>>, vector<1x8xf32>
    tpu.vector_store %arg7[%c0_26, %c0_27], %30 {strides = array<i32>} : memref<1x8xf32, #tpu.memory_space<vmem>>, vector<1x8xf32>,
    return
  }
  func.func @transform_0(%arg0: i32, %arg1: i32) -> (i32, i32, i32) {
    %c0_i32 = arith.constant 0 : i32
    %c0_i32_0 = arith.constant 0 : i32
    return %arg0, %c0_i32, %arg1 : i32, i32, i32
  }
  func.func @transform_1(%arg0: i32, %arg1: i32) -> (i32, i32, i32) {
    %c0_i32 = arith.constant 0 : i32
    %c0_i32_0 = arith.constant 0 : i32
    %c0_i32_1 = arith.constant 0 : i32
    %c0_i32_2 = arith.constant 0 : i32
    return %c0_i32, %c0_i32_0, %c0_i32_1 : i32, i32, i32
  }
  func.func @transform_2(%arg0: i32, %arg1: i32) -> (i32, i32) {
    %c0_i32 = arith.constant 0 : i32
    %c0_i32_0 = arith.constant 0 : i32
    %c0_i32_1 = arith.constant 0 : i32
    return %c0_i32, %c0_i32_0 : i32, i32
  }
  func.func @transform_3(%arg0: i32, %arg1: i32) -> (i32, i32, i32) {
    %c0_i32 = arith.constant 0 : i32
    %c0_i32_0 = arith.constant 0 : i32
    return %arg0, %c0_i32, %arg1 : i32, i32, i32
  }
}

</mosaic_0001>

<bundles_post_ra>
// kernel: tpu_custom_call.1
= control target key start
LH: loop header
LB: loop body
LE: loop exit
PB: predicated region body
PF: predicated region fallthrough
CT: control target
= control target key end

     0   :  { %8 = vsyncpa [#allocation5], 0  ;;  %s1117_s0 = inlined_call_operand.hbm [shape: f32[2,8,16], index: 0, kind: input, shape index: {}]   ;;  %s1118_s1 = inlined_call_operand.hbm [shape: f32[3,8,8], index: 1, kind: input, shape index: {}]   ;;  %s1119_s2 = inlined_call_operand.vmem [shape: f32[1,8], index: 2, kind: input, shape index: {}]   ;;  %s1120_s3 = inlined_call_operand.hbm [shape: f32[2,8,8], index: 3, kind: output, shape index: {}]  }
   0x1   :  { %10 = vsyncpa [#allocation5 + $0x1], 0 }
   0x2   :  { %11 = vsyncpa [#allocation8], 0 }
   0x3   :  { %12 = vsyncpa [#allocation6], 0 }
   0x4   :  { %14 = vsyncpa [#allocation6 + $0x1], 0  ;;  %s926_s12 = smov 0   ;;  %s928_s13 = smov 0  }
   0x5   :  { %s930_s14 = smov 0   ;;  %s932_s15 = smov 0  }
   0x6   :  { %s934_s16 = smov 0   ;;  %s936_s17 = smov 0  }
   0x7 LB: > { %s642_s18 = sadd.s32 4294967295, %s897_s17   ;;  %s643_s19 = sadd.s32 4294967294, %s897_s17   ;;  %s897_s17 = sphi %s936_s17, %s20_s17   ;;  %s893_s16 = sphi %s934_s16, %s1138_s16   ;;  %s889_s15 = sphi %s932_s15, %s1137_s15   ;;  %s885_s14 = sphi %s930_s14, %s1136_s14   ;;  %s881_s13 = sphi %s928_s13, %s1135_s13   ;;  %s877_s12 = sphi %s926_s12, %s1134_s12  }
   0x8   : > { %p54_p0 = scmp.ne.s32.totalorder %s881_s13, %s877_s12  ;;  %p960_p1 = scmp.eq.s32.totalorder %s642_s18, 0 }
   0x9   : > { %p964_p2 = scmp.eq.s32.totalorder %s642_s18, 1  ;;  %p128_p3 = scmp.eq.s32.totalorder %s643_s19, 1 }
   0xa   : > { %p970_p4 = por %p960_p1, %p54_p0  ;;  %p644_p5 = scmp.ge.s32.totalorder %s897_s17, 1 }
   0xb   : > { %p975_p6 = por %p128_p3, %p54_p0  ;;  %p135_p7 = scmp.lt.s32.totalorder %s897_s17, 3 }
   0xc   : > { %s1124_s22 = scalar_select %p970_p4, 1, 0 }
   0xd   : > { %s1125_s23 = scalar_select %p975_p6, 1, 0 }
   0xe   : > { %p980_p8 = pnand %p644_p5, %p135_p7  ;;  %s899_s25 = smov [#allocation7]  }
   0xf   : > { %s147_s26 = sshll.u32 %s899_s25, 4  ;;  %s32_s28 = sadd.s32 1, %s893_s16  ;;  %s148_s26 = int_to_ptr.vmem [resolvable:$true] %s147_s26 }
  0x10   : > { %p690_p9 = pneg %p980_p8  ;;  %s770_s29 = scalar_lea.vmem %s148_s26, 384 }
  0x11   : > { %p771_p13 = scmp.ne.s32.totalorder %s148_s26, %s770_s29  ;;  %p778_p5 = scmp.lt.s32.totalorder %s148_s26, %s148_s26 }
  0x12   : > { %p989_p11 = pnand %p690_p9, %p960_p1  ;;  %p779_p7 = scmp.lt.s32.totalorder %s770_s29, %s770_s29 }
  0x14   : > { %p761_p12 = pneg %p989_p11  ;;  %p780_p6 = por %p779_p7, %p778_p5 }
  0x16   : > { %p773_p0 = pnand %p771_p13, %p761_p12 }
  0x18   : > { %p774_p3 = pneg %p773_p0 }
  0x1a   : > { %p781_p4 = pnand %p780_p6, %p774_p3 }
  0x1c   : > { %784 = shalt.err (!%p781_p4)
}
  0x1d   : > { %s900_s30 = smov 128   ;;  %s901_s4 = smov 8  }
  0x1e   : > { %693 = dma.hbm_to_vmem [thread:$0]  (!%p989_p11), %s1118_s1, 384, %s148_s26, [#allocation8], %s900_s30, %s900_s30, %s901_s4  }
  0x1f   : > { %p34_p6 = scmp.ge.s32.totalorder %s32_s28, 2  ;;  %s41_s7 = sadd.s32 1, %s885_s14 }
  0x20   : > { %p48_p4 = scmp.ne.s32.totalorder %s885_s14, %s881_s13  ;;  %p49_p9 = scmp.eq.s32.totalorder %s897_s17, 0 }
  0x21   : > { %s1140_s28 = smov (%p34_p6, %s32_s28), 0  ;;  %p703_p0 = scmp.lt.s32.totalorder %s897_s17, 2 }
  0x22   : > { %p1007_p12 = por %p49_p9, %p48_p4  ;;  %p1013_p13 = por %p964_p2, %p48_p4 }
  0x23   : > { %s36_s10 = ssub.s32 %s893_s16, %s1140_s28  ;;  %s164_s11 = sand.u32 1, %s885_s14  }
  0x24   : > { %p39_p11 = scmp.eq.s32.totalorder %s36_s10, 0  ;;  %s647_s18 = sshll.u32 %s164_s11, 3 }
  0x25   : > { %s648_s25 = sshll.u32 %s893_s16, 7  ;;  %s168_s30 = scalar_lea.vmem [#allocation4], %s647_s18 }
  0x26   : > { %s1022_s19 = scalar_select %p39_p11, %s885_s14, %s41_s7  }
  0x27   : > { %s174_s29 = scalar_lea.hbm %s1117_s0, %s648_s25  ;;  %s176_s4 = sshll.u32 %s168_s30, 4  ;;  %s177_s4 = int_to_ptr.vmem [resolvable:$true] %s176_s4 }
  0x28   : > { %p1030_p2 = pnand %p703_p0, %p1007_p12  ;;  %s165_s5 = scalar_lea.sflag [#allocation5], %s164_s11 }
  0x29   : > { %s798_s6 = scalar_lea.vmem %s177_s4, 128  ;;  %s902_s7 = smov [#allocation4]  }
  0x2a   : > { %p787_p3 = pneg %p1030_p2  ;;  %p799_p5 = scmp.ne.s32.totalorder %s177_s4, %s798_s6 }
  0x2b   : > { %s803_s10 = sshll.u32 %s902_s7, 4  ;;  %s804_s10 = int_to_ptr.vmem [resolvable:$false] %s803_s10 }
  0x2c   : > { %p801_p7 = pnand %p799_p5, %p787_p3  ;;  %s805_s25 = scalar_lea.vmem %s804_s10, 256 }
  0x2d   : > { %p806_p4 = scmp.lt.s32.totalorder %s177_s4, %s804_s10  ;;  %p807_p9 = scmp.lt.s32.totalorder %s805_s25, %s798_s6 }
  0x2e   : > { %p802_p6 = pneg %p801_p7 }
  0x2f   : > { %p808_p11 = por %p807_p9, %p806_p4 }
  0x31   : > { %p809_p10 = pnand %p808_p11, %p802_p6 }
  0x33   : > { %812 = shalt.err (!%p809_p10)
}
  0x34   : > { %697 = dma.hbm_to_vmem [thread:$0]  (!%p1030_p2), %s174_s29, 128, %s177_s4, %s165_s5  }
  0x35   : > { %185 = sbr.rel (%p980_p8) target bundleno = 539 (0x21b), region = 32  ;;  %s1041_s8 = sand.u32 (!%p980_p8), 1, %s881_s13  }
  0x36   : > { %s650_s11 = sshll.u32 (!%p980_p8), %s1041_s8, 3  ;;  %s188_s18 = scalar_lea.sflag (!%p980_p8), [#allocation5], %s1041_s8 }
  0x37   : > { %s191_s26 = scalar_lea.vmem (!%p980_p8), [#allocation4], %s650_s11  ;;  %p1131_p12 = scmp.ne.s32.totalorder (!%p980_p8), %s1124_s22, 0 }
  0x3a   : > { %864 = dma.done.wait (%p1131_p12), %s188_s18, 128  }
  0x3b   : > { %866 = vsyncadd (%p1131_p12), %s188_s18, 4294967168 }
  0x3c   : > { %868 = dma.done.wait (%p960_p1), [#allocation8], 384  }
  0x3d   : > { %870 = vsyncadd (%p960_p1), [#allocation8], 4294966912  ;;  %v224_v0 = vld [vmem:[%s191_s26] sm:$0xff]  ;;  %vm222_vm0 = vcmask 57344   ;;  %v903_v1 = vmov 0.0   ;;  %v271_v2 = vld [vmem:[#allocation7 + $0x8] sm:$0xff] }
  0x3e   : > { %225 = vxpose.xlu0.b32.start.end [1/1] (short) (narrow) %v224_v0, 16  ;;  %667 = vmatprep.subr.mxu0 %v903_v1  ;;  %223 = vst.msk [vmem:[#allocation3] sm:$0x1] %vm222_vm0, %v903_v1  ;;  %vm904_vm1 = vmmov 0   ;;  %v269_v3 = vld [vmem:[#allocation7] sm:$0xff]  ;;  %vm257_vm2 = vcmask 64512  }
  0x3f   : > { %672 = vmatprep.subr.mxu1 %v903_v1  ;;  %668 = vmatpush3.msra.mxu0 %v271_v2  ;;  %v419_v7 = vld [vmem:[#allocation7 + $0x10] sm:$0xff]  ;;  %vm267_vm3 = vcmask 1040384   ;;  %v656_v19 = vld [vmem:[%s1119_s2] ss:$0 sm:$0xff]  ;;  %s658_s24 = sshll.u32 %s889_s15, 7  ;;  %s217_s27 = scalar_lea.vmem [#allocation9], %s650_s11 }
  0x40   : > { %669 = vmatprep.mubr.msk.f32.mxu0 %vm904_vm1, %v903_v1  ;;  %677 = vmatprep.subr.mxu0 %v903_v1  ;;  %s552_s29 = sshll.u32 %s217_s27, 4  ;;  %s1074_s21 = scalar_lea.hbm %s1120_s3, %s658_s24  ;;  %s553_s29 = int_to_ptr.vmem [resolvable:$true] %s552_s29 }
  0x41   : > { %674 = vmatprep.mubr.msk.f32.mxu1 %vm904_vm1, %v903_v1  ;;  %673 = vmatpush3.msra.mxu1 %v269_v3  ;;  %s538_s5 = scalar_lea.sflag [#allocation6], %s1041_s8  ;;  %s813_s6 = scalar_lea.vmem %s553_s29, 128 }
  0x42   : > { %p814_p1 = scmp.ne.s32.totalorder %s553_s29, %s813_s6  ;;  %s905_s7 = smov [#allocation9]  }
  0x43   : > { %s817_s15 = sshll.u32 %s905_s7, 4  ;;  %s818_s15 = int_to_ptr.vmem [resolvable:$false] %s817_s15 }
  0x44   : > { %p815_p8 = pnand %p814_p1, %p1013_p13  ;;  %s819_s10 = scalar_lea.vmem %s818_s15, 256 }
  0x45   : > { %v263_v6 = vld [vmem:[#allocation3] sm:$0x1]  ;;  %p820_p0 = scmp.lt.s32.totalorder %s553_s29, %s818_s15  ;;  %p821_p2 = scmp.lt.s32.totalorder %s819_s10, %s813_s6 }
  0x46   : > { %p816_p10 = pneg %p815_p8 }
  0x47   : > { %p822_p3 = por %p821_p2, %p820_p0 }
  0x49   : > { %p823_p5 = pnand %p822_p3, %p816_p10 }
  0xba   : > { %v241_v4 = vpop.trf.xlu0 }
  0xbb   : > { %258 = vst.msk [vmem:[#allocation2] sm:$0xff] %vm257_vm2, %v241_v4 }
  0xbe   : > { %v242_v5 = vpop.trf.xlu0 }
  0xbf   : > { %259 = vst.msk [vmem:[#allocation2 + $0x8] sm:$0xff] %vm257_vm2, %v242_v5 }
  0xc6   : > { %v260_v8 = vld [vmem:[#allocation2] ss:$2 sm:$0xff]  ;;  %v262_v9 = vld [vmem:[#allocation2 + $0x1] ss:$2 sm:$0xff] }
  0xc7   : > { %v534_v10 = vld [vmem:[#allocation2 + $0xf] sm:$0x1]  ;;  %670 = vmatmul.mubr.msk.f32.vlgmr.msra.gmra.mxu0 %vm257_vm2, %v260_v8  ;;  %v265_v11 = vrot.slane %v262_v9, 7 }
  0xc8   : > { %536 = vst.msk [vmem:[#allocation3] sm:$0x1] %vm222_vm0, %v534_v10  ;;  %678 = vmatpush3.msra.mxu0 %v419_v7  ;;  %679 = vmatprep.mubr.msk.f32.mxu0 %vm904_vm1, %v903_v1 }
  0xc9   : > { %v268_v12 = vsel %vm267_vm3, %v263_v6, %v265_v11 }
  0xca   : > { %675 = vmatmul.mubr.msk.f32.vlgmr.msra.gmra.mxu1 %vm257_vm2, %v268_v12 }
  0xcb   : > { %680 = vmatmul.mubr.msk.f32.vlgmr.msra.gmra.mxu0 %vm257_vm2, %v262_v9 }
 0x187   : > { %v341_v13 = vpop.f32.mrf.mxu0 }
 0x189   : > { %v671_v14 = vpop.f32.mrf.mxu0 }
 0x18a   : > { %v414_v15 = vpop.f32.mrf.mxu1 }
 0x18b   : > { %v415_v16 = vadd.f32 %v414_v15, %v341_v13  ;;  %v488_v17 = vpop.f32.mrf.mxu0 }
 0x18c   : > { %v676_v18 = vpop.f32.mrf.mxu1 }
 0x18d   : > { %v492_v20 = vadd.f32 %v488_v17, %v415_v16  ;;  %v681_v21 = vpop.f32.mrf.mxu0 }
 0x18f   : > { %v500_v22 = vadd.f32 %v656_v19, %v492_v20 }
 0x191   : > { %501 = vxpose.xlu0.b32.start.end [1/1] (short) (narrow) %v500_v22, 8 }
 0x20d   : > { %v517_v23 = vpop.trf.xlu0 }
 0x20e   : > { %533 = vst.msk [vmem:[%s217_s27] sm:$0xff] %vm257_vm2, %v517_v23 }
 0x20f   : > { %826 = shalt.err (!%p823_p5)
}
 0x210   : > { %s827_s25 = scalar_lea.hbm %s1074_s21, 128  ;;  %s831_s18 = scalar_lea.hbm %s1120_s3, 256 }
 0x211   : > { %p828_p7 = scmp.ne.s32.totalorder %s1074_s21, %s827_s25  ;;  %p832_p9 = scmp.lt.s32.totalorder %s1074_s21, %s1120_s3 }
 0x212   : > { %p833_p11 = scmp.lt.s32.totalorder %s831_s18, %s827_s25 }
 0x213   : > { %p829_p6 = pnand %p828_p7, %p1013_p13 }
 0x214   : > { %p834_p12 = por %p833_p11, %p832_p9 }
 0x215   : > { %p830_p4 = pneg %p829_p6 }
 0x217   : > { %p835_p1 = pnand %p834_p12, %p830_p4 }
 0x219   : > { %838 = shalt.err (!%p835_p1)
}
 0x21a   : > { %688 = dma.vmem_to_hbm [thread:$0]  (%p1013_p13), %s553_s29, 128, %s1074_s21, %s538_s5  }
 0x21b PF: > { %s564_s22 = sand.u32 1, %s877_s12   ;;  %p1132_p8 = scmp.ne.s32.totalorder %s1125_s23, 0 }
 0x21c   : > { %p1133_p10 = scmp.ge.s32.totalorder %s897_s17, 2  ;;  %s565_s24 = scalar_lea.sflag [#allocation6], %s564_s22 }
 0x21e   : > { %p699_p0 = pnand %p1133_p10, %p1132_p8 }
 0x220   : > { %p700_p2 = pneg %p699_p0 }
 0x222   : > { %872 = dma.done.wait (%p700_p2), %s565_s24, 128  }
 0x223   : > { %874 = vsyncadd (%p700_p2), %s565_s24, 4294967168  ;;  %s20_s17 = sadd.s32 1, %s897_s17   ;;  %s1134_s12 = smov %s881_s13 }
 0x224   : > { %p17_p3 = scmp.ge.s32.totalorder %s20_s17, 4   ;;  %s1135_s13 = smov %s885_s14 }
 0x225   : > { %s1136_s14 = smov %s1022_s19  ;;  %s1137_s15 = smov %s893_s16 }
 0x226   : > { %s1138_s16 = smov %s1140_s28  ;;  %19 = sbr.rel (!%p17_p3) target bundleno = 7 (0x7), region = 88 }
 0x22b   :  { %570 = vsyncpa [#allocation5], 1 }
 0x22c   :  { %572 = vsyncpa [#allocation5 + $0x1], 1 }
 0x22d   :  { %573 = vsyncpa [#allocation8], 1 }
 0x22e   :  { %574 = vsyncpa [#allocation6], 1 }
 0x22f   :  { %576 = vsyncpa [#allocation6 + $0x1], 1 }

</bundles_post_ra>
